<compile_context>
chip_gen: v5e
topology: v5e:2x2
jax: 0.10.0
libtpu: 0.0.40
codegen_flags: <defaults>
</compile_context>

<pallas_src>
import jax
import jax.numpy as jnp
from jax.experimental import pallas as pl
from jax.experimental.pallas import tpu as pltpu


def _make_identity_dma_kernel(chunks):
    """Build a kernel that copies `chunks` = [(row_start, n_rows), ...] HBM->HBM.

    All starts/sizes are Python ints (static at trace time), so the loops
    fully unroll and every DMA has a static shape — ragged tails included.
    """

    def kernel(x_hbm, o_hbm, sems):
        copies = []
        for i, (start, size) in enumerate(chunks):
            cp = pltpu.make_async_copy(
                x_hbm.at[pl.ds(start, size)],
                o_hbm.at[pl.ds(start, size)],
                sems.at[i],
            )
            cp.start()
            copies.append(cp)
        for cp in copies:
            cp.wait()

    return kernel


def identity_embedding(x: jax.Array) -> jax.Array:
    """IdentityEmbedding.forward: return x unchanged (zero HBM traffic)."""
    return x


def identity_embedding_copy(
    x: jax.Array,
    *,
    target_chunk_bytes: int = 16 * 1024 * 1024,
    max_chunks: int = 8,
) -> jax.Array:
    """Pallas placeholder for IdentityEmbedding: materialize a copy of x.

    Streams the exact bytes of x with a few concurrent HBM->HBM DMAs
    (chunked along the leading axis so multiple DMA engines can be in
    flight for large tensors).  No padding, no VMEM round trip, no alias.
    """
    if x.size == 0 or x.ndim == 0:
        # Nothing to stream / no leading axis to chunk — identity is exact.
        return x

    itemsize = jnp.dtype(x.dtype).itemsize
    lead = int(x.shape[0])
    total_bytes = int(x.size) * itemsize

    # Chunk plan over the leading axis (all Python ints -> static DMAs).
    n_chunks = max(1, min(max_chunks, lead, -(-total_bytes // target_chunk_bytes)))
    base, rem = divmod(lead, n_chunks)
    sizes = [base + (1 if i < rem else 0) for i in range(n_chunks)]
    sizes = [s for s in sizes if s > 0]
    starts = [sum(sizes[:i]) for i in range(len(sizes))]
    chunks = list(zip(starts, sizes))

    return pl.pallas_call(
        _make_identity_dma_kernel(chunks),
        out_shape=jax.ShapeDtypeStruct(x.shape, x.dtype),
        in_specs=[pl.BlockSpec(memory_space=pl.ANY)],   # raw HBM ref, no auto-DMA
        out_specs=pl.BlockSpec(memory_space=pl.ANY),    # DMA straight into HBM output
        scratch_shapes=[pltpu.SemaphoreType.DMA((len(chunks),))],
        cost_estimate=pl.CostEstimate(
            flops=0, transcendentals=0, bytes_accessed=2 * total_bytes),
    )(x)


if __name__ == "__main__":
    key = jax.random.PRNGKey(0)
    k0, k1, k2 = jax.random.split(key, 3)

    # NeRF-style input: batch of 3D positions, (batch*samples, 3).
    x = jax.random.normal(k0, (256, 3), dtype=jnp.float32)

    # True identity path: no kernel, no HBM traffic.
    y_id = identity_embedding(x)
    assert y_id.shape == x.shape and y_id.dtype == x.dtype
    assert bool(jnp.all(y_id == x))

    # Pallas placeholder path: single-chunk HBM->HBM DMA copy.
    y = jax.block_until_ready(identity_embedding_copy(x))
    assert y.shape == x.shape and y.dtype == x.dtype
    assert bool(jnp.all(y == x))

    # Multi-chunk path + ragged, non-(8,128)-friendly shape — no padding needed.
    x_odd = jax.random.normal(k1, (37, 5), dtype=jnp.float32)
    y_odd = jax.block_until_ready(
        identity_embedding_copy(x_odd, target_chunk_bytes=128, max_chunks=4))
    assert y_odd.shape == x_odd.shape and y_odd.dtype == x_odd.dtype
    assert bool(jnp.all(y_odd == x_odd))

    # bf16 path (single whole-array DMA).
    x_bf = jax.random.normal(k2, (64, 3)).astype(jnp.bfloat16)
    y_bf = jax.block_until_ready(identity_embedding_copy(x_bf))
    assert y_bf.shape == x_bf.shape and y_bf.dtype == x_bf.dtype
    assert bool(jnp.all(y_bf == x_bf))

    print("KERNEL_OK")
</pallas_src>

<mosaic_0001>
module attributes {stable_mosaic.version = 11 : i64} {
  func.func @kernel(%arg0: memref<256x3xf32, #tpu.memory_space<any>>, %arg1: memref<256x3xf32, #tpu.memory_space<any>>, %arg2: memref<1x!tpu.dma_semaphore, #tpu.memory_space<semaphore_mem>>) attributes {dimension_semantics = [], scalar_prefetch = 0 : i64, scratch_operands = 1 : i64, tpu.core_type = #tpu.core_type<tc>} {
    %c0_i32 = arith.constant 0 : i32
    %c0_i32_0 = arith.constant 0 : i32
    %c0_i32_1 = arith.constant 0 : i32
    %0 = tpu.memref_slice %arg0[%c0_i32_0, %c0_i32_1] : memref<256x3xf32, #tpu.memory_space<any>> -> memref<256x3xf32, #tpu.memory_space<any>>
    %c0_i32_2 = arith.constant 0 : i32
    %c0_i32_3 = arith.constant 0 : i32
    %1 = tpu.memref_slice %arg1[%c0_i32_2, %c0_i32_3] : memref<256x3xf32, #tpu.memory_space<any>> -> memref<256x3xf32, #tpu.memory_space<any>>
    %2 = tpu.memref_slice %arg2[%c0_i32] : memref<1x!tpu.dma_semaphore, #tpu.memory_space<semaphore_mem>> -> memref<1x!tpu.dma_semaphore, #tpu.memory_space<semaphore_mem>>
    %3 = tpu.memref_squeeze %2 : memref<1x!tpu.dma_semaphore, #tpu.memory_space<semaphore_mem>> -> memref<!tpu.dma_semaphore, #tpu.memory_space<semaphore_mem>>
    tpu.enqueue_dma source(%0 : memref<256x3xf32, #tpu.memory_space<any>>) target(%1 : memref<256x3xf32, #tpu.memory_space<any>>) target_semaphore(%3 : memref<!tpu.dma_semaphore, #tpu.memory_space<semaphore_mem>>)
    %c0_i32_4 = arith.constant 0 : i32
    %c0_i32_5 = arith.constant 0 : i32
    %c0_i32_6 = arith.constant 0 : i32
    %4 = tpu.memref_slice %arg0[%c0_i32_5, %c0_i32_6] : memref<256x3xf32, #tpu.memory_space<any>> -> memref<256x3xf32, #tpu.memory_space<any>>
    %c0_i32_7 = arith.constant 0 : i32
    %c0_i32_8 = arith.constant 0 : i32
    %5 = tpu.memref_slice %arg1[%c0_i32_7, %c0_i32_8] : memref<256x3xf32, #tpu.memory_space<any>> -> memref<256x3xf32, #tpu.memory_space<any>>
    %6 = tpu.memref_slice %arg2[%c0_i32_4] : memref<1x!tpu.dma_semaphore, #tpu.memory_space<semaphore_mem>> -> memref<1x!tpu.dma_semaphore, #tpu.memory_space<semaphore_mem>>
    %7 = tpu.memref_squeeze %6 : memref<1x!tpu.dma_semaphore, #tpu.memory_space<semaphore_mem>> -> memref<!tpu.dma_semaphore, #tpu.memory_space<semaphore_mem>>
    tpu.wait_dma2 semaphore(%7 : memref<!tpu.dma_semaphore, #tpu.memory_space<semaphore_mem>>) src(%4 : memref<256x3xf32, #tpu.memory_space<any>>) dst(%5 : memref<256x3xf32, #tpu.memory_space<any>>)
    return
  }
}

</mosaic_0001>

<bundles_post_ra>
// kernel: tpu_custom_call.1
= control target key start
LH: loop header
LB: loop body
LE: loop exit
PB: predicated region body
PF: predicated region fallthrough
CT: control target
= control target key end

     0   :  { %s304_s0 = inlined_call_operand.vmem [shape: f32[256,3], index: 0, kind: input, shape index: {}]   ;;  %s305_s1 = inlined_call_operand.vmem [shape: f32[256,3], index: 1, kind: output, shape index: {}]  }
   0x1   :  { %v16_v0 = vld [vmem:[%s304_s0] sm:$0xff]  ;;  %v18_v1 = vld [vmem:[%s304_s0 + $0x8] sm:$0xff]  ;;  %v20_v2 = vld [vmem:[%s304_s0 + $0x10] sm:$0xff] }
   0x2   :  { %17 = vst [vmem:[%s305_s1] sm:$0xff] %v16_v0  ;;  %v22_v3 = vld [vmem:[%s304_s0 + $0x18] sm:$0xff]  ;;  %v24_v4 = vld [vmem:[%s304_s0 + $0x20] sm:$0xff]  ;;  %v26_v5 = vld [vmem:[%s304_s0 + $0x28] sm:$0xff] }
   0x3   :  { %19 = vst [vmem:[%s305_s1 + $0x8] sm:$0xff] %v18_v1  ;;  %v28_v6 = vld [vmem:[%s304_s0 + $0x30] sm:$0xff]  ;;  %v30_v7 = vld [vmem:[%s304_s0 + $0x38] sm:$0xff]  ;;  %v32_v8 = vld [vmem:[%s304_s0 + $0x40] sm:$0xff] }
   0x4   :  { %21 = vst [vmem:[%s305_s1 + $0x10] sm:$0xff] %v20_v2  ;;  %v34_v9 = vld [vmem:[%s304_s0 + $0x48] sm:$0xff]  ;;  %v36_v10 = vld [vmem:[%s304_s0 + $0x50] sm:$0xff]  ;;  %v38_v11 = vld [vmem:[%s304_s0 + $0x58] sm:$0xff] }
   0x5   :  { %23 = vst [vmem:[%s305_s1 + $0x18] sm:$0xff] %v22_v3  ;;  %v40_v12 = vld [vmem:[%s304_s0 + $0x60] sm:$0xff]  ;;  %v42_v13 = vld [vmem:[%s304_s0 + $0x68] sm:$0xff]  ;;  %v44_v14 = vld [vmem:[%s304_s0 + $0x70] sm:$0xff] }
   0x6   :  { %25 = vst [vmem:[%s305_s1 + $0x20] sm:$0xff] %v24_v4  ;;  %v46_v15 = vld [vmem:[%s304_s0 + $0x78] sm:$0xff]  ;;  %v48_v16 = vld [vmem:[%s304_s0 + $0x80] sm:$0xff]  ;;  %v50_v17 = vld [vmem:[%s304_s0 + $0x88] sm:$0xff] }
   0x7   :  { %27 = vst [vmem:[%s305_s1 + $0x28] sm:$0xff] %v26_v5  ;;  %v52_v18 = vld [vmem:[%s304_s0 + $0x90] sm:$0xff]  ;;  %v54_v19 = vld [vmem:[%s304_s0 + $0x98] sm:$0xff]  ;;  %v56_v20 = vld [vmem:[%s304_s0 + $0xa0] sm:$0xff] }
   0x8   :  { %29 = vst [vmem:[%s305_s1 + $0x30] sm:$0xff] %v28_v6  ;;  %v58_v21 = vld [vmem:[%s304_s0 + $0xa8] sm:$0xff]  ;;  %v60_v22 = vld [vmem:[%s304_s0 + $0xb0] sm:$0xff]  ;;  %v62_v23 = vld [vmem:[%s304_s0 + $0xb8] sm:$0xff] }
   0x9   :  { %31 = vst [vmem:[%s305_s1 + $0x38] sm:$0xff] %v30_v7  ;;  %v64_v24 = vld [vmem:[%s304_s0 + $0xc0] sm:$0xff]  ;;  %v66_v25 = vld [vmem:[%s304_s0 + $0xc8] sm:$0xff]  ;;  %v68_v26 = vld [vmem:[%s304_s0 + $0xd0] sm:$0xff] }
   0xa   :  { %33 = vst [vmem:[%s305_s1 + $0x40] sm:$0xff] %v32_v8  ;;  %v70_v27 = vld [vmem:[%s304_s0 + $0xd8] sm:$0xff]  ;;  %v72_v28 = vld [vmem:[%s304_s0 + $0xe0] sm:$0xff]  ;;  %v74_v29 = vld [vmem:[%s304_s0 + $0xe8] sm:$0xff] }
   0xb   :  { %35 = vst [vmem:[%s305_s1 + $0x48] sm:$0xff] %v34_v9  ;;  %v76_v30 = vld [vmem:[%s304_s0 + $0xf0] sm:$0xff]  ;;  %v78_v31 = vld [vmem:[%s304_s0 + $0xf8] sm:$0xff] }
   0xc   :  { %37 = vst [vmem:[%s305_s1 + $0x50] sm:$0xff] %v36_v10 }
   0xd   :  { %39 = vst [vmem:[%s305_s1 + $0x58] sm:$0xff] %v38_v11 }
   0xe   :  { %41 = vst [vmem:[%s305_s1 + $0x60] sm:$0xff] %v40_v12 }
   0xf   :  { %43 = vst [vmem:[%s305_s1 + $0x68] sm:$0xff] %v42_v13 }
  0x10   :  { %45 = vst [vmem:[%s305_s1 + $0x70] sm:$0xff] %v44_v14 }
  0x11   :  { %47 = vst [vmem:[%s305_s1 + $0x78] sm:$0xff] %v46_v15 }
  0x12   :  { %49 = vst [vmem:[%s305_s1 + $0x80] sm:$0xff] %v48_v16 }
  0x13   :  { %51 = vst [vmem:[%s305_s1 + $0x88] sm:$0xff] %v50_v17 }
  0x14   :  { %53 = vst [vmem:[%s305_s1 + $0x90] sm:$0xff] %v52_v18 }
  0x15   :  { %55 = vst [vmem:[%s305_s1 + $0x98] sm:$0xff] %v54_v19 }
  0x16   :  { %57 = vst [vmem:[%s305_s1 + $0xa0] sm:$0xff] %v56_v20 }
  0x17   :  { %59 = vst [vmem:[%s305_s1 + $0xa8] sm:$0xff] %v58_v21 }
  0x18   :  { %61 = vst [vmem:[%s305_s1 + $0xb0] sm:$0xff] %v60_v22 }
  0x19   :  { %63 = vst [vmem:[%s305_s1 + $0xb8] sm:$0xff] %v62_v23 }
  0x1a   :  { %65 = vst [vmem:[%s305_s1 + $0xc0] sm:$0xff] %v64_v24 }
  0x1b   :  { %67 = vst [vmem:[%s305_s1 + $0xc8] sm:$0xff] %v66_v25 }
  0x1c   :  { %69 = vst [vmem:[%s305_s1 + $0xd0] sm:$0xff] %v68_v26 }
  0x1d   :  { %71 = vst [vmem:[%s305_s1 + $0xd8] sm:$0xff] %v70_v27 }
  0x1e   :  { %73 = vst [vmem:[%s305_s1 + $0xe0] sm:$0xff] %v72_v28 }
  0x1f   :  { %75 = vst [vmem:[%s305_s1 + $0xe8] sm:$0xff] %v74_v29 }
  0x20   :  { %77 = vst [vmem:[%s305_s1 + $0xf0] sm:$0xff] %v76_v30 }
  0x21   :  { %79 = vst [vmem:[%s305_s1 + $0xf8] sm:$0xff] %v78_v31 }
  0x22   :  { %85 = vsyncadd [#allocation2], 4096 }
  0x23   :  { %100 = dma.done.wait [#allocation2], 4096 }
  0x24   :  { %101 = vsyncadd [#allocation2], 4294963200 }
  0x25   :  { %89 = vsyncmov [#allocation2] }
  0x28   :  { %s90_s18 = vpop.sfrf %89 }
  0x29   :  { %p99_p0 = scmp.ne.s32.totalorder %s90_s18, 0 }
  0x2b   :  { %94 = shalt.err (%p99_p0)  }

</bundles_post_ra>
